<compile_context>
chip_gen: v5e
topology: v5e:2x2
jax: 0.10.0
libtpu: 0.0.40
codegen_flags: <defaults>
</compile_context>

<pallas_src>
import math
import numpy as np
import jax
import jax.numpy as jnp
from jax import lax
from jax.experimental import pallas as pl
from jax.experimental.pallas import tpu as pltpu

# Problem sizes (small, consistent with the module's constructor)
SEQ = 8        # L
BATCH = 2      # N
EMBED = 32     # E
FF = 64        # dim_feedforward
HEADS = 4
HEAD_DIM = EMBED // HEADS
EPS = 1e-5
NEG_INF = -1e30   # finite: exp underflows cleanly, no -inf/NaN edge cases

# ---- packed-constant layout: weights + small vectors row-stacked at lane offset 0 ----
PACK_LANES = 128
ROW_WQK = 0                    # (E, 2E)  q|k projection, pre-transposed, q cols pre-scaled
ROW_WV  = EMBED                # (E, E)   v projection, pre-transposed
ROW_WO  = 2 * EMBED            # (E, E)   out projection, pre-transposed
ROW_W1  = 3 * EMBED            # (E, F)   linear1, pre-transposed
ROW_W2  = 4 * EMBED            # (F, E)   linear2, pre-transposed
ROW_VEC = 4 * EMBED + FF       # 9 rows of small vectors (biases / LayerNorm params)
N_VEC   = 9
PACK_ROWS = ((ROW_VEC + N_VEC + 7) // 8) * 8   # 208 rows (multiple of 8 sublanes)


def _layernorm(x, gamma, beta):
    mu = jnp.mean(x, axis=-1, keepdims=True)
    var = jnp.mean((x - mu) ** 2, axis=-1, keepdims=True)
    return (x - mu) * lax.rsqrt(var + EPS) * gamma + beta


def encoder_layer_kernel(src_ref, pos_ref, pack_ref, out_ref):
    E, F, H, Dh, N = EMBED, FF, HEADS, HEAD_DIM, BATCH
    R = src_ref.shape[0]                      # L*N flattened tokens (row = l*N + n)

    src = src_ref[...]                        # (R, E)
    sp = src + pos_ref[...]                   # (R, E)  q/k input (pos folded in-kernel, ~free)

    # Static sublane-range slices of the single packed constant (lane offset 0 everywhere).
    w_qk = pack_ref[ROW_WQK:ROW_WQK + E, 0:2 * E]      # (E, 2E)
    w_v  = pack_ref[ROW_WV:ROW_WV + E, 0:E]            # (E, E)
    wo   = pack_ref[ROW_WO:ROW_WO + E, 0:E]            # (E, E)
    w1   = pack_ref[ROW_W1:ROW_W1 + E, 0:F]            # (E, F)
    w2   = pack_ref[ROW_W2:ROW_W2 + F, 0:E]            # (F, E)
    vec  = pack_ref[ROW_VEC:PACK_ROWS, :]              # (16, 128) small-vector rows
    b_qk = vec[0:1, 0:2 * E]
    b_v  = vec[1:2, 0:E]
    bo   = vec[2:3, 0:E]
    b1   = vec[3:4, 0:F]
    b2   = vec[4:5, 0:E]
    g1   = vec[5:6, 0:E]
    be1  = vec[6:7, 0:E]
    g2   = vec[7:8, 0:E]
    be2  = vec[8:9, 0:E]

    # Projections: q/k from (src + pos), v from src; q-scale 1/sqrt(Dh) baked into W_q/b_q.
    qk = jnp.dot(sp, w_qk, preferred_element_type=jnp.float32) + b_qk    # (R, 2E) = [q | k]
    v  = jnp.dot(src, w_v, preferred_element_type=jnp.float32) + b_v     # (R, E)
    q  = qk[:, 0:E]
    kT = qk[:, E:2 * E].T                     # (E, R): ONE hoisted transpose, not one per head

    # Additive batch block mask built in-kernel (row batch-id = row % N).
    row_b = lax.broadcasted_iota(jnp.int32, (R, R), 0) % N
    col_b = lax.broadcasted_iota(jnp.int32, (R, R), 1) % N
    bias = jnp.where(row_b == col_b, 0.0, NEG_INF)

    # Per-head attention; output projection accumulated in the loop (vreg accumulator,
    # no 8-lane masked ctx stores, no VMEM scratch).
    attn_acc = jnp.zeros((R, E), jnp.float32)
    for h in range(H):
        s0 = h * Dh
        qh  = q[:, s0:s0 + Dh]                # (R, Dh)
        kTh = kT[s0:s0 + Dh, :]               # (Dh, R) sublane slice (8-row aligned)
        vh  = v[:, s0:s0 + Dh]                # (R, Dh)
        scores = jnp.dot(qh, kTh, preferred_element_type=jnp.float32) + bias   # (R, R)
        m = jnp.max(scores, axis=-1, keepdims=True)
        p = jnp.exp(scores - m)
        denom = jnp.sum(p, axis=-1, keepdims=True)
        r = pl.reciprocal(denom, approx=True)          # EUP slot (otherwise idle)
        r = r * (2.0 - denom * r)                      # one Newton step -> full f32 precision
        ctx_h = jnp.dot(p, vh, preferred_element_type=jnp.float32) * r         # (R, Dh)
        attn_acc = attn_acc + jnp.dot(ctx_h, wo[s0:s0 + Dh, :],
                                      preferred_element_type=jnp.float32)
    attn_out = attn_acc + bo

    # residual + LayerNorm1 (dropout1 = identity in eval mode)
    x = _layernorm(src + attn_out, g1, be1)

    # FFN: linear1 -> relu -> (dropout = identity) -> linear2
    h1 = jnp.maximum(jnp.dot(x, w1, preferred_element_type=jnp.float32) + b1, 0.0)
    y = jnp.dot(h1, w2, preferred_element_type=jnp.float32) + b2

    # residual + LayerNorm2 (dropout2 = identity)
    out_ref[...] = _layernorm(x + y, g2, be2).astype(out_ref.dtype)


def pack_params(params):
    """One-time host-side repack: pre-transpose weights, bake the 1/sqrt(Dh) q-scale,
    stack everything into one lane-dense (PACK_ROWS, 128) constant (lane offset 0)."""
    w_in, b_in, w_o, b_o, w1, b1, w2, b2, g1, be1, g2, be2 = params
    E, F = EMBED, FF
    scale = 1.0 / math.sqrt(HEAD_DIM)
    w_qk_t = jnp.concatenate([w_in[:E].T * scale, w_in[E:2 * E].T], axis=1)   # (E, 2E)
    b_qk = jnp.concatenate([b_in[:, :E] * scale, b_in[:, E:2 * E]], axis=1)   # (1, 2E)
    w_v_t = w_in[2 * E:].T                                                    # (E, E)
    b_v = b_in[:, 2 * E:]                                                     # (1, E)

    pack = jnp.zeros((PACK_ROWS, PACK_LANES), jnp.float32)
    pack = pack.at[ROW_WQK:ROW_WQK + E, 0:2 * E].set(w_qk_t)
    pack = pack.at[ROW_WV:ROW_WV + E, 0:E].set(w_v_t)
    pack = pack.at[ROW_WO:ROW_WO + E, 0:E].set(w_o.T)
    pack = pack.at[ROW_W1:ROW_W1 + E, 0:F].set(w1.T)
    pack = pack.at[ROW_W2:ROW_W2 + F, 0:E].set(w2.T)
    pack = pack.at[ROW_VEC + 0, 0:2 * E].set(b_qk[0])
    pack = pack.at[ROW_VEC + 1, 0:E].set(b_v[0])
    pack = pack.at[ROW_VEC + 2, 0:E].set(b_o[0])
    pack = pack.at[ROW_VEC + 3, 0:F].set(b1[0])
    pack = pack.at[ROW_VEC + 4, 0:E].set(b2[0])
    pack = pack.at[ROW_VEC + 5, 0:E].set(g1[0])
    pack = pack.at[ROW_VEC + 6, 0:E].set(be1[0])
    pack = pack.at[ROW_VEC + 7, 0:E].set(g2[0])
    pack = pack.at[ROW_VEC + 8, 0:E].set(be2[0])
    return pack


@jax.jit
def transformer_encoder_layer(reid_feats_lne, pos_lne, pack):
    """reid_feats_lne, pos_lne: (L, N, E) float32 (PyTorch layout). Returns (L, N, E)."""
    L, N, E = reid_feats_lne.shape
    assert N == BATCH and E == EMBED and pack.shape == (PACK_ROWS, PACK_LANES)
    R = L * N
    # free reshapes (no transpose): (L, N, E) <-> (L*N, E), row = l*N + n
    src2d = reid_feats_lne.reshape(R, E)
    pos2d = pos_lne.reshape(R, E)
    vmem = pl.BlockSpec(memory_space=pltpu.MemorySpace.VMEM)
    out2d = pl.pallas_call(
        encoder_layer_kernel,
        out_shape=jax.ShapeDtypeStruct((R, E), reid_feats_lne.dtype),
        in_specs=[vmem, vmem, vmem],
        out_specs=vmem,
    )(src2d, pos2d, pack)
    return out2d.reshape(L, N, E)


def init_params(key):
    """PyTorch-layout parameters (in_proj (3E,E), etc.)."""
    ks = jax.random.split(key, 8)
    w_in = jax.random.normal(ks[0], (3 * EMBED, EMBED), jnp.float32) * 0.05
    b_in = jax.random.normal(ks[1], (1, 3 * EMBED), jnp.float32) * 0.02
    w_o = jax.random.normal(ks[2], (EMBED, EMBED), jnp.float32) * 0.05
    b_o = jax.random.normal(ks[3], (1, EMBED), jnp.float32) * 0.02
    w1 = jax.random.normal(ks[4], (FF, EMBED), jnp.float32) * 0.05
    b1 = jax.random.normal(ks[5], (1, FF), jnp.float32) * 0.02
    w2 = jax.random.normal(ks[6], (EMBED, FF), jnp.float32) * 0.05
    b2 = jax.random.normal(ks[7], (1, EMBED), jnp.float32) * 0.02
    g1 = jnp.ones((1, EMBED), jnp.float32)
    be1 = jnp.zeros((1, EMBED), jnp.float32)
    g2 = jnp.ones((1, EMBED), jnp.float32)
    be2 = jnp.zeros((1, EMBED), jnp.float32)
    return (w_in, b_in, w_o, b_o, w1, b1, w2, b2, g1, be1, g2, be2)


def reference_layer(reid_feats_lne, pos_lne, params):
    """Pure-JAX reference mirroring PyTorch eval-mode semantics."""
    w_in, b_in, w_o, b_o, w1, b1, w2, b2, g1, be1, g2, be2 = params
    src = jnp.transpose(reid_feats_lne, (1, 0, 2))   # (N, L, E)
    pos = jnp.transpose(pos_lne, (1, 0, 2))
    E = EMBED
    qk = src + pos
    q = qk @ w_in[:E].T + b_in[:, :E]
    k = qk @ w_in[E:2 * E].T + b_in[:, E:2 * E]
    v = src @ w_in[2 * E:].T + b_in[:, 2 * E:]

    def split(x):
        return x.reshape(x.shape[0], x.shape[1], HEADS, HEAD_DIM)

    qh, kh, vh = split(q), split(k), split(v)
    scores = jnp.einsum('nqhd,nkhd->nhqk', qh, kh) / math.sqrt(HEAD_DIM)
    p = jax.nn.softmax(scores, axis=-1)
    ctx = jnp.einsum('nhqk,nkhd->nqhd', p, vh).reshape(src.shape)
    attn_out = ctx @ w_o.T + b_o

    def layernorm(x, g, b):
        mu = jnp.mean(x, axis=-1, keepdims=True)
        var = jnp.mean((x - mu) ** 2, axis=-1, keepdims=True)
        return (x - mu) * jax.lax.rsqrt(var + EPS) * g + b

    x = layernorm(src + attn_out, g1, be1)
    y = jax.nn.relu(x @ w1.T + b1) @ w2.T + b2
    out = layernorm(x + y, g2, be2)
    return jnp.transpose(out, (1, 0, 2))


if __name__ == "__main__":
    key = jax.random.PRNGKey(0)
    k_x, k_p, k_w = jax.random.split(key, 3)
    reid_feats = jax.random.normal(k_x, (SEQ, BATCH, EMBED), jnp.float32)
    pos = jax.random.normal(k_p, (SEQ, BATCH, EMBED), jnp.float32)
    params = init_params(k_w)

    pack = jax.block_until_ready(pack_params(params))   # one-time weight repack
    out = jax.block_until_ready(transformer_encoder_layer(reid_feats, pos, pack))

    ref = jax.block_until_ready(reference_layer(reid_feats, pos, params))
    np.testing.assert_allclose(np.asarray(out), np.asarray(ref), rtol=1e-4, atol=1e-4)

    print("KERNEL_OK")
</pallas_src>

<mosaic_0001>
module attributes {stable_mosaic.version = 11 : i64} {
  func.func @encoder_layer_kernel(%arg0: memref<16x32xf32, #tpu.memory_space<vmem>>, %arg1: memref<16x32xf32, #tpu.memory_space<vmem>>, %arg2: memref<208x128xf32, #tpu.memory_space<vmem>>, %arg3: memref<16x32xf32, #tpu.memory_space<vmem>>) attributes {dimension_semantics = [], scalar_prefetch = 0 : i64, scratch_operands = 0 : i64, tpu.core_type = #tpu.core_type<tc>} {
    %c0 = arith.constant 0 : index
    %c0_0 = arith.constant 0 : index
    %0 = vector.load %arg0[%c0, %c0_0] : memref<16x32xf32, #tpu.memory_space<vmem>>, vector<16x32xf32>
    %c0_1 = arith.constant 0 : index
    %c0_2 = arith.constant 0 : index
    %1 = vector.load %arg1[%c0_1, %c0_2] : memref<16x32xf32, #tpu.memory_space<vmem>>, vector<16x32xf32>
    %2 = arith.addf %0, %1 : vector<16x32xf32>
    %c0_3 = arith.constant 0 : index
    %c0_4 = arith.constant 0 : index
    %3 = vector.load %arg2[%c0_3, %c0_4] : memref<208x128xf32, #tpu.memory_space<vmem>>, vector<32x64xf32>
    %c32 = arith.constant 32 : index
    %c0_5 = arith.constant 0 : index
    %4 = vector.load %arg2[%c32, %c0_5] : memref<208x128xf32, #tpu.memory_space<vmem>>, vector<32x32xf32>
    %c64 = arith.constant 64 : index
    %c0_6 = arith.constant 0 : index
    %5 = vector.load %arg2[%c64, %c0_6] : memref<208x128xf32, #tpu.memory_space<vmem>>, vector<32x32xf32>
    %c96 = arith.constant 96 : index
    %c0_7 = arith.constant 0 : index
    %6 = vector.load %arg2[%c96, %c0_7] : memref<208x128xf32, #tpu.memory_space<vmem>>, vector<32x64xf32>
    %c128 = arith.constant 128 : index
    %c0_8 = arith.constant 0 : index
    %7 = vector.load %arg2[%c128, %c0_8] : memref<208x128xf32, #tpu.memory_space<vmem>>, vector<64x32xf32>
    %c192 = arith.constant 192 : index
    %c0_9 = arith.constant 0 : index
    %8 = vector.load %arg2[%c192, %c0_9] : memref<208x128xf32, #tpu.memory_space<vmem>>, vector<16x128xf32>
    %9 = vector.extract_strided_slice %8 {offsets = [0, 0], sizes = [1, 64], strides = [1, 1]} : vector<16x128xf32> to vector<1x64xf32>
    %10 = vector.extract_strided_slice %8 {offsets = [1, 0], sizes = [1, 32], strides = [1, 1]} : vector<16x128xf32> to vector<1x32xf32>
    %11 = vector.extract_strided_slice %8 {offsets = [2, 0], sizes = [1, 32], strides = [1, 1]} : vector<16x128xf32> to vector<1x32xf32>
    %12 = vector.extract_strided_slice %8 {offsets = [3, 0], sizes = [1, 64], strides = [1, 1]} : vector<16x128xf32> to vector<1x64xf32>
    %13 = vector.extract_strided_slice %8 {offsets = [4, 0], sizes = [1, 32], strides = [1, 1]} : vector<16x128xf32> to vector<1x32xf32>
    %14 = vector.extract_strided_slice %8 {offsets = [5, 0], sizes = [1, 32], strides = [1, 1]} : vector<16x128xf32> to vector<1x32xf32>
    %15 = vector.extract_strided_slice %8 {offsets = [6, 0], sizes = [1, 32], strides = [1, 1]} : vector<16x128xf32> to vector<1x32xf32>
    %16 = vector.extract_strided_slice %8 {offsets = [7, 0], sizes = [1, 32], strides = [1, 1]} : vector<16x128xf32> to vector<1x32xf32>
    %17 = vector.extract_strided_slice %8 {offsets = [8, 0], sizes = [1, 32], strides = [1, 1]} : vector<16x128xf32> to vector<1x32xf32>
    %cst = arith.constant dense<0.000000e+00> : vector<16x64xf32>
    %18 = tpu.matmul %2, %3, %cst {dimension_numbers = #tpu.dot_dimension_numbers<[1], [0], [0], [1], [0, 0, 1, 1], [], []>} : vector<16x32xf32>, vector<32x64xf32>, vector<16x64xf32> -> vector<16x64xf32>
    %19 = vector.broadcast %9 : vector<1x64xf32> to vector<16x64xf32>
    %20 = arith.addf %18, %19 : vector<16x64xf32>
    %cst_10 = arith.constant dense<0.000000e+00> : vector<16x32xf32>
    %21 = tpu.matmul %0, %4, %cst_10 {dimension_numbers = #tpu.dot_dimension_numbers<[1], [0], [0], [1], [0, 0, 1, 1], [], []>} : vector<16x32xf32>, vector<32x32xf32>, vector<16x32xf32> -> vector<16x32xf32>
    %22 = vector.broadcast %10 : vector<1x32xf32> to vector<16x32xf32>
    %23 = arith.addf %21, %22 : vector<16x32xf32>
    %24 = vector.extract_strided_slice %20 {offsets = [0, 0], sizes = [16, 32], strides = [1, 1]} : vector<16x64xf32> to vector<16x32xf32>
    %25 = vector.extract_strided_slice %20 {offsets = [0, 32], sizes = [16, 32], strides = [1, 1]} : vector<16x64xf32> to vector<16x32xf32>
    %26 = tpu.transpose %25, [1, 0] : vector<16x32xf32> -> vector<32x16xf32>
    %27 = tpu.iota {dimensions = array<i32: 0>} : vector<16x16xi32>
    %c2_i32 = arith.constant 2 : i32
    %c0_i32 = arith.constant 0 : i32
    %28 = arith.cmpi eq, %c2_i32, %c0_i32 : i32
    %c1_i32 = arith.constant 1 : i32
    %29 = arith.select %28, %c1_i32, %c2_i32 : i32
    %30 = vector.broadcast %29 : i32 to vector<16x16xi32>
    %31 = arith.remsi %27, %30 : vector<16x16xi32>
    %c0_i32_11 = arith.constant 0 : i32
    %32 = vector.broadcast %c0_i32_11 : i32 to vector<16x16xi32>
    %33 = arith.cmpi ne, %31, %32 : vector<16x16xi32>
    %c0_i32_12 = arith.constant 0 : i32
    %34 = vector.broadcast %c0_i32_12 : i32 to vector<16x16xi32>
    %35 = arith.cmpi slt, %31, %34 : vector<16x16xi32>
    %c0_i32_13 = arith.constant 0 : i32
    %36 = arith.cmpi slt, %29, %c0_i32_13 : i32
    %37 = vector.broadcast %36 : i1 to vector<16x16xi1>
    %38 = vector.broadcast %37 : vector<16x16xi1> to vector<16x16xi1>
    %39 = arith.xori %35, %38 : vector<16x16xi1>
    %40 = arith.andi %39, %33 : vector<16x16xi1>
    %41 = vector.broadcast %29 : i32 to vector<16x16xi32>
    %42 = arith.addi %31, %41 : vector<16x16xi32>
    %43 = arith.select %40, %42, %31 : vector<16x16xi1>, vector<16x16xi32>
    %44 = tpu.iota {dimensions = array<i32: 1>} : vector<16x16xi32>
    %c2_i32_14 = arith.constant 2 : i32
    %c0_i32_15 = arith.constant 0 : i32
    %45 = arith.cmpi eq, %c2_i32_14, %c0_i32_15 : i32
    %c1_i32_16 = arith.constant 1 : i32
    %46 = arith.select %45, %c1_i32_16, %c2_i32_14 : i32
    %47 = vector.broadcast %46 : i32 to vector<16x16xi32>
    %48 = arith.remsi %44, %47 : vector<16x16xi32>
    %c0_i32_17 = arith.constant 0 : i32
    %49 = vector.broadcast %c0_i32_17 : i32 to vector<16x16xi32>
    %50 = arith.cmpi ne, %48, %49 : vector<16x16xi32>
    %c0_i32_18 = arith.constant 0 : i32
    %51 = vector.broadcast %c0_i32_18 : i32 to vector<16x16xi32>
    %52 = arith.cmpi slt, %48, %51 : vector<16x16xi32>
    %c0_i32_19 = arith.constant 0 : i32
    %53 = arith.cmpi slt, %46, %c0_i32_19 : i32
    %54 = vector.broadcast %53 : i1 to vector<16x16xi1>
    %55 = vector.broadcast %54 : vector<16x16xi1> to vector<16x16xi1>
    %56 = arith.xori %52, %55 : vector<16x16xi1>
    %57 = arith.andi %56, %50 : vector<16x16xi1>
    %58 = vector.broadcast %46 : i32 to vector<16x16xi32>
    %59 = arith.addi %48, %58 : vector<16x16xi32>
    %60 = arith.select %57, %59, %48 : vector<16x16xi1>, vector<16x16xi32>
    %61 = arith.cmpi eq, %43, %60 : vector<16x16xi32>
    %cst_20 = arith.constant 0.000000e+00 : f32
    %cst_21 = arith.constant -1.000000e+30 : f32
    %62 = vector.broadcast %cst_20 : f32 to vector<16x16xf32>
    %63 = vector.broadcast %cst_21 : f32 to vector<16x16xf32>
    %64 = arith.select %61, %62, %63 : vector<16x16xi1>, vector<16x16xf32>
    %cst_22 = arith.constant 0.000000e+00 : f32
    %65 = vector.broadcast %cst_22 : f32 to vector<16x32xf32>
    %66 = vector.extract_strided_slice %24 {offsets = [0, 0], sizes = [16, 8], strides = [1, 1]} : vector<16x32xf32> to vector<16x8xf32>
    %67 = vector.extract_strided_slice %26 {offsets = [0, 0], sizes = [8, 16], strides = [1, 1]} : vector<32x16xf32> to vector<8x16xf32>
    %68 = vector.extract_strided_slice %23 {offsets = [0, 0], sizes = [16, 8], strides = [1, 1]} : vector<16x32xf32> to vector<16x8xf32>
    %cst_23 = arith.constant dense<0.000000e+00> : vector<16x16xf32>
    %69 = tpu.matmul %66, %67, %cst_23 {dimension_numbers = #tpu.dot_dimension_numbers<[1], [0], [0], [1], [0, 0, 1, 1], [], []>} : vector<16x8xf32>, vector<8x16xf32>, vector<16x16xf32> -> vector<16x16xf32>
    %70 = arith.addf %69, %64 : vector<16x16xf32>
    %cst_24 = arith.constant dense<0xFF800000> : vector<16xf32>
    %71 = vector.multi_reduction <maximumf>, %70, %cst_24 [1] : vector<16x16xf32> to vector<16xf32>
    %72 = vector.shape_cast %71 : vector<16xf32> to vector<16x1xf32>
    %73 = vector.broadcast %72 : vector<16x1xf32> to vector<16x16xf32>
    %74 = arith.subf %70, %73 : vector<16x16xf32>
    %75 = math.exp %74 : vector<16x16xf32>
    %cst_25 = arith.constant dense<0.000000e+00> : vector<16xf32>
    %76 = vector.multi_reduction <add>, %75, %cst_25 [1] : vector<16x16xf32> to vector<16xf32>
    %77 = vector.shape_cast %76 : vector<16xf32> to vector<16x1xf32>
    %78 = tpu.reciprocal %77 {approx = true} : vector<16x1xf32> -> vector<16x1xf32>
    %79 = arith.mulf %77, %78 : vector<16x1xf32>
    %cst_26 = arith.constant 2.000000e+00 : f32
    %80 = vector.broadcast %cst_26 : f32 to vector<16x1xf32>
    %81 = arith.subf %80, %79 : vector<16x1xf32>
    %82 = arith.mulf %78, %81 : vector<16x1xf32>
    %cst_27 = arith.constant dense<0.000000e+00> : vector<16x8xf32>
    %83 = tpu.matmul %75, %68, %cst_27 {dimension_numbers = #tpu.dot_dimension_numbers<[1], [0], [0], [1], [0, 0, 1, 1], [], []>} : vector<16x16xf32>, vector<16x8xf32>, vector<16x8xf32> -> vector<16x8xf32>
    %84 = vector.broadcast %82 : vector<16x1xf32> to vector<16x8xf32>
    %85 = arith.mulf %83, %84 : vector<16x8xf32>
    %86 = vector.extract_strided_slice %5 {offsets = [0, 0], sizes = [8, 32], strides = [1, 1]} : vector<32x32xf32> to vector<8x32xf32>
    %cst_28 = arith.constant dense<0.000000e+00> : vector<16x32xf32>
    %87 = tpu.matmul %85, %86, %cst_28 {dimension_numbers = #tpu.dot_dimension_numbers<[1], [0], [0], [1], [0, 0, 1, 1], [], []>} : vector<16x8xf32>, vector<8x32xf32>, vector<16x32xf32> -> vector<16x32xf32>
    %88 = arith.addf %65, %87 : vector<16x32xf32>
    %89 = vector.extract_strided_slice %24 {offsets = [0, 8], sizes = [16, 8], strides = [1, 1]} : vector<16x32xf32> to vector<16x8xf32>
    %90 = vector.extract_strided_slice %26 {offsets = [8, 0], sizes = [8, 16], strides = [1, 1]} : vector<32x16xf32> to vector<8x16xf32>
    %91 = vector.extract_strided_slice %23 {offsets = [0, 8], sizes = [16, 8], strides = [1, 1]} : vector<16x32xf32> to vector<16x8xf32>
    %cst_29 = arith.constant dense<0.000000e+00> : vector<16x16xf32>
    %92 = tpu.matmul %89, %90, %cst_29 {dimension_numbers = #tpu.dot_dimension_numbers<[1], [0], [0], [1], [0, 0, 1, 1], [], []>} : vector<16x8xf32>, vector<8x16xf32>, vector<16x16xf32> -> vector<16x16xf32>
    %93 = arith.addf %92, %64 : vector<16x16xf32>
    %cst_30 = arith.constant dense<0xFF800000> : vector<16xf32>
    %94 = vector.multi_reduction <maximumf>, %93, %cst_30 [1] : vector<16x16xf32> to vector<16xf32>
    %95 = vector.shape_cast %94 : vector<16xf32> to vector<16x1xf32>
    %96 = vector.broadcast %95 : vector<16x1xf32> to vector<16x16xf32>
    %97 = arith.subf %93, %96 : vector<16x16xf32>
    %98 = math.exp %97 : vector<16x16xf32>
    %cst_31 = arith.constant dense<0.000000e+00> : vector<16xf32>
    %99 = vector.multi_reduction <add>, %98, %cst_31 [1] : vector<16x16xf32> to vector<16xf32>
    %100 = vector.shape_cast %99 : vector<16xf32> to vector<16x1xf32>
    %101 = tpu.reciprocal %100 {approx = true} : vector<16x1xf32> -> vector<16x1xf32>
    %102 = arith.mulf %100, %101 : vector<16x1xf32>
    %cst_32 = arith.constant 2.000000e+00 : f32
    %103 = vector.broadcast %cst_32 : f32 to vector<16x1xf32>
    %104 = arith.subf %103, %102 : vector<16x1xf32>
    %105 = arith.mulf %101, %104 : vector<16x1xf32>
    %cst_33 = arith.constant dense<0.000000e+00> : vector<16x8xf32>
    %106 = tpu.matmul %98, %91, %cst_33 {dimension_numbers = #tpu.dot_dimension_numbers<[1], [0], [0], [1], [0, 0, 1, 1], [], []>} : vector<16x16xf32>, vector<16x8xf32>, vector<16x8xf32> -> vector<16x8xf32>
    %107 = vector.broadcast %105 : vector<16x1xf32> to vector<16x8xf32>
    %108 = arith.mulf %106, %107 : vector<16x8xf32>
    %109 = vector.extract_strided_slice %5 {offsets = [8, 0], sizes = [8, 32], strides = [1, 1]} : vector<32x32xf32> to vector<8x32xf32>
    %cst_34 = arith.constant dense<0.000000e+00> : vector<16x32xf32>
    %110 = tpu.matmul %108, %109, %cst_34 {dimension_numbers = #tpu.dot_dimension_numbers<[1], [0], [0], [1], [0, 0, 1, 1], [], []>} : vector<16x8xf32>, vector<8x32xf32>, vector<16x32xf32> -> vector<16x32xf32>
    %111 = arith.addf %88, %110 : vector<16x32xf32>
    %112 = vector.extract_strided_slice %24 {offsets = [0, 16], sizes = [16, 8], strides = [1, 1]} : vector<16x32xf32> to vector<16x8xf32>
    %113 = vector.extract_strided_slice %26 {offsets = [16, 0], sizes = [8, 16], strides = [1, 1]} : vector<32x16xf32> to vector<8x16xf32>
    %114 = vector.extract_strided_slice %23 {offsets = [0, 16], sizes = [16, 8], strides = [1, 1]} : vector<16x32xf32> to vector<16x8xf32>
    %cst_35 = arith.constant dense<0.000000e+00> : vector<16x16xf32>
    %115 = tpu.matmul %112, %113, %cst_35 {dimension_numbers = #tpu.dot_dimension_numbers<[1], [0], [0], [1], [0, 0, 1, 1], [], []>} : vector<16x8xf32>, vector<8x16xf32>, vector<16x16xf32> -> vector<16x16xf32>
    %116 = arith.addf %115, %64 : vector<16x16xf32>
    %cst_36 = arith.constant dense<0xFF800000> : vector<16xf32>
    %117 = vector.multi_reduction <maximumf>, %116, %cst_36 [1] : vector<16x16xf32> to vector<16xf32>
    %118 = vector.shape_cast %117 : vector<16xf32> to vector<16x1xf32>
    %119 = vector.broadcast %118 : vector<16x1xf32> to vector<16x16xf32>
    %120 = arith.subf %116, %119 : vector<16x16xf32>
    %121 = math.exp %120 : vector<16x16xf32>
    %cst_37 = arith.constant dense<0.000000e+00> : vector<16xf32>
    %122 = vector.multi_reduction <add>, %121, %cst_37 [1] : vector<16x16xf32> to vector<16xf32>
    %123 = vector.shape_cast %122 : vector<16xf32> to vector<16x1xf32>
    %124 = tpu.reciprocal %123 {approx = true} : vector<16x1xf32> -> vector<16x1xf32>
    %125 = arith.mulf %123, %124 : vector<16x1xf32>
    %cst_38 = arith.constant 2.000000e+00 : f32
    %126 = vector.broadcast %cst_38 : f32 to vector<16x1xf32>
    %127 = arith.subf %126, %125 : vector<16x1xf32>
    %128 = arith.mulf %124, %127 : vector<16x1xf32>
    %cst_39 = arith.constant dense<0.000000e+00> : vector<16x8xf32>
    %129 = tpu.matmul %121, %114, %cst_39 {dimension_numbers = #tpu.dot_dimension_numbers<[1], [0], [0], [1], [0, 0, 1, 1], [], []>} : vector<16x16xf32>, vector<16x8xf32>, vector<16x8xf32> -> vector<16x8xf32>
    %130 = vector.broadcast %128 : vector<16x1xf32> to vector<16x8xf32>
    %131 = arith.mulf %129, %130 : vector<16x8xf32>
    %132 = vector.extract_strided_slice %5 {offsets = [16, 0], sizes = [8, 32], strides = [1, 1]} : vector<32x32xf32> to vector<8x32xf32>
    %cst_40 = arith.constant dense<0.000000e+00> : vector<16x32xf32>
    %133 = tpu.matmul %131, %132, %cst_40 {dimension_numbers = #tpu.dot_dimension_numbers<[1], [0], [0], [1], [0, 0, 1, 1], [], []>} : vector<16x8xf32>, vector<8x32xf32>, vector<16x32xf32> -> vector<16x32xf32>
    %134 = arith.addf %111, %133 : vector<16x32xf32>
    %135 = vector.extract_strided_slice %24 {offsets = [0, 24], sizes = [16, 8], strides = [1, 1]} : vector<16x32xf32> to vector<16x8xf32>
    %136 = vector.extract_strided_slice %26 {offsets = [24, 0], sizes = [8, 16], strides = [1, 1]} : vector<32x16xf32> to vector<8x16xf32>
    %137 = vector.extract_strided_slice %23 {offsets = [0, 24], sizes = [16, 8], strides = [1, 1]} : vector<16x32xf32> to vector<16x8xf32>
    %cst_41 = arith.constant dense<0.000000e+00> : vector<16x16xf32>
    %138 = tpu.matmul %135, %136, %cst_41 {dimension_numbers = #tpu.dot_dimension_numbers<[1], [0], [0], [1], [0, 0, 1, 1], [], []>} : vector<16x8xf32>, vector<8x16xf32>, vector<16x16xf32> -> vector<16x16xf32>
    %139 = arith.addf %138, %64 : vector<16x16xf32>
    %cst_42 = arith.constant dense<0xFF800000> : vector<16xf32>
    %140 = vector.multi_reduction <maximumf>, %139, %cst_42 [1] : vector<16x16xf32> to vector<16xf32>
    %141 = vector.shape_cast %140 : vector<16xf32> to vector<16x1xf32>
    %142 = vector.broadcast %141 : vector<16x1xf32> to vector<16x16xf32>
    %143 = arith.subf %139, %142 : vector<16x16xf32>
    %144 = math.exp %143 : vector<16x16xf32>
    %cst_43 = arith.constant dense<0.000000e+00> : vector<16xf32>
    %145 = vector.multi_reduction <add>, %144, %cst_43 [1] : vector<16x16xf32> to vector<16xf32>
    %146 = vector.shape_cast %145 : vector<16xf32> to vector<16x1xf32>
    %147 = tpu.reciprocal %146 {approx = true} : vector<16x1xf32> -> vector<16x1xf32>
    %148 = arith.mulf %146, %147 : vector<16x1xf32>
    %cst_44 = arith.constant 2.000000e+00 : f32
    %149 = vector.broadcast %cst_44 : f32 to vector<16x1xf32>
    %150 = arith.subf %149, %148 : vector<16x1xf32>
    %151 = arith.mulf %147, %150 : vector<16x1xf32>
    %cst_45 = arith.constant dense<0.000000e+00> : vector<16x8xf32>
    %152 = tpu.matmul %144, %137, %cst_45 {dimension_numbers = #tpu.dot_dimension_numbers<[1], [0], [0], [1], [0, 0, 1, 1], [], []>} : vector<16x16xf32>, vector<16x8xf32>, vector<16x8xf32> -> vector<16x8xf32>
    %153 = vector.broadcast %151 : vector<16x1xf32> to vector<16x8xf32>
    %154 = arith.mulf %152, %153 : vector<16x8xf32>
    %155 = vector.extract_strided_slice %5 {offsets = [24, 0], sizes = [8, 32], strides = [1, 1]} : vector<32x32xf32> to vector<8x32xf32>
    %cst_46 = arith.constant dense<0.000000e+00> : vector<16x32xf32>
    %156 = tpu.matmul %154, %155, %cst_46 {dimension_numbers = #tpu.dot_dimension_numbers<[1], [0], [0], [1], [0, 0, 1, 1], [], []>} : vector<16x8xf32>, vector<8x32xf32>, vector<16x32xf32> -> vector<16x32xf32>
    %157 = arith.addf %134, %156 : vector<16x32xf32>
    %158 = vector.broadcast %11 : vector<1x32xf32> to vector<16x32xf32>
    %159 = arith.addf %157, %158 : vector<16x32xf32>
    %160 = arith.addf %0, %159 : vector<16x32xf32>
    %cst_47 = arith.constant dense<0.000000e+00> : vector<16xf32>
    %161 = vector.multi_reduction <add>, %160, %cst_47 [1] : vector<16x32xf32> to vector<16xf32>
    %162 = vector.shape_cast %161 : vector<16xf32> to vector<16x1xf32>
    %cst_48 = arith.constant 3.200000e+01 : f32
    %163 = vector.broadcast %cst_48 : f32 to vector<16x1xf32>
    %164 = arith.divf %162, %163 : vector<16x1xf32>
    %165 = vector.broadcast %164 : vector<16x1xf32> to vector<16x32xf32>
    %166 = arith.subf %160, %165 : vector<16x32xf32>
    %167 = arith.mulf %166, %166 : vector<16x32xf32>
    %cst_49 = arith.constant dense<0.000000e+00> : vector<16xf32>
    %168 = vector.multi_reduction <add>, %167, %cst_49 [1] : vector<16x32xf32> to vector<16xf32>
    %169 = vector.shape_cast %168 : vector<16xf32> to vector<16x1xf32>
    %cst_50 = arith.constant 3.200000e+01 : f32
    %170 = vector.broadcast %cst_50 : f32 to vector<16x1xf32>
    %171 = arith.divf %169, %170 : vector<16x1xf32>
    %172 = vector.broadcast %164 : vector<16x1xf32> to vector<16x32xf32>
    %173 = arith.subf %160, %172 : vector<16x32xf32>
    %cst_51 = arith.constant 9.99999974E-6 : f32
    %174 = vector.broadcast %cst_51 : f32 to vector<16x1xf32>
    %175 = arith.addf %171, %174 : vector<16x1xf32>
    %176 = math.rsqrt %175 : vector<16x1xf32>
    %177 = vector.broadcast %176 : vector<16x1xf32> to vector<16x32xf32>
    %178 = arith.mulf %173, %177 : vector<16x32xf32>
    %179 = vector.broadcast %14 : vector<1x32xf32> to vector<16x32xf32>
    %180 = arith.mulf %178, %179 : vector<16x32xf32>
    %181 = vector.broadcast %15 : vector<1x32xf32> to vector<16x32xf32>
    %182 = arith.addf %180, %181 : vector<16x32xf32>
    %cst_52 = arith.constant dense<0.000000e+00> : vector<16x64xf32>
    %183 = tpu.matmul %182, %6, %cst_52 {dimension_numbers = #tpu.dot_dimension_numbers<[1], [0], [0], [1], [0, 0, 1, 1], [], []>} : vector<16x32xf32>, vector<32x64xf32>, vector<16x64xf32> -> vector<16x64xf32>
    %184 = vector.broadcast %12 : vector<1x64xf32> to vector<16x64xf32>
    %185 = arith.addf %183, %184 : vector<16x64xf32>
    %cst_53 = arith.constant 0.000000e+00 : f32
    %186 = vector.broadcast %cst_53 : f32 to vector<16x64xf32>
    %187 = arith.maximumf %185, %186 : vector<16x64xf32>
    %cst_54 = arith.constant dense<0.000000e+00> : vector<16x32xf32>
    %188 = tpu.matmul %187, %7, %cst_54 {dimension_numbers = #tpu.dot_dimension_numbers<[1], [0], [0], [1], [0, 0, 1, 1], [], []>} : vector<16x64xf32>, vector<64x32xf32>, vector<16x32xf32> -> vector<16x32xf32>
    %189 = vector.broadcast %13 : vector<1x32xf32> to vector<16x32xf32>
    %190 = arith.addf %188, %189 : vector<16x32xf32>
    %191 = arith.addf %182, %190 : vector<16x32xf32>
    %cst_55 = arith.constant dense<0.000000e+00> : vector<16xf32>
    %192 = vector.multi_reduction <add>, %191, %cst_55 [1] : vector<16x32xf32> to vector<16xf32>
    %193 = vector.shape_cast %192 : vector<16xf32> to vector<16x1xf32>
    %cst_56 = arith.constant 3.200000e+01 : f32
    %194 = vector.broadcast %cst_56 : f32 to vector<16x1xf32>
    %195 = arith.divf %193, %194 : vector<16x1xf32>
    %196 = vector.broadcast %195 : vector<16x1xf32> to vector<16x32xf32>
    %197 = arith.subf %191, %196 : vector<16x32xf32>
    %198 = arith.mulf %197, %197 : vector<16x32xf32>
    %cst_57 = arith.constant dense<0.000000e+00> : vector<16xf32>
    %199 = vector.multi_reduction <add>, %198, %cst_57 [1] : vector<16x32xf32> to vector<16xf32>
    %200 = vector.shape_cast %199 : vector<16xf32> to vector<16x1xf32>
    %cst_58 = arith.constant 3.200000e+01 : f32
    %201 = vector.broadcast %cst_58 : f32 to vector<16x1xf32>
    %202 = arith.divf %200, %201 : vector<16x1xf32>
    %203 = vector.broadcast %195 : vector<16x1xf32> to vector<16x32xf32>
    %204 = arith.subf %191, %203 : vector<16x32xf32>
    %cst_59 = arith.constant 9.99999974E-6 : f32
    %205 = vector.broadcast %cst_59 : f32 to vector<16x1xf32>
    %206 = arith.addf %202, %205 : vector<16x1xf32>
    %207 = math.rsqrt %206 : vector<16x1xf32>
    %208 = vector.broadcast %207 : vector<16x1xf32> to vector<16x32xf32>
    %209 = arith.mulf %204, %208 : vector<16x32xf32>
    %210 = vector.broadcast %16 : vector<1x32xf32> to vector<16x32xf32>
    %211 = arith.mulf %209, %210 : vector<16x32xf32>
    %212 = vector.broadcast %17 : vector<1x32xf32> to vector<16x32xf32>
    %213 = arith.addf %211, %212 : vector<16x32xf32>
    %c0_60 = arith.constant 0 : index
    %c0_61 = arith.constant 0 : index
    %214 = vector.load %arg3[%c0_60, %c0_61] : memref<16x32xf32, #tpu.memory_space<vmem>>, vector<16x32xf32>
    tpu.vector_store %arg3[%c0_60, %c0_61], %213 {strides = array<i32>} : memref<16x32xf32, #tpu.memory_space<vmem>>, vector<16x32xf32>,
    return
  }
}

</mosaic_0001>

<bundles_post_ra>
// kernel: transformer_encoder_layer.1
= control target key start
LH: loop header
LB: loop body
LE: loop exit
PB: predicated region body
PF: predicated region fallthrough
CT: control target
= control target key end

     0   :  { %8 = vsyncpa [#allocation3], 0  ;;  %s1334_s0 = inlined_call_operand.hbm [shape: f32[16,32], index: 0, kind: input, shape index: {}]   ;;  %s1335_s1 = inlined_call_operand.hbm [shape: f32[16,32], index: 1, kind: input, shape index: {}]   ;;  %s1336_s2 = inlined_call_operand.hbm [shape: f32[208,128], index: 2, kind: input, shape index: {}]   ;;  %s1337_s3 = inlined_call_operand.hbm [shape: f32[16,32], index: 3, kind: output, shape index: {}]  }
   0x1   :  { %9 = vsyncpa [#allocation6], 0 }
   0x2   :  { %10 = vsyncpa [#allocation4], 0  ;;  %s28_s14 = sshll.u32 %s1335_s1, 4  ;;  %s1137_s15 = smov [#allocation5]   ;;  %s29_s14 = int_to_ptr.hbm [resolvable:$true] %s28_s14 }
   0x3   :  { %s30_s16 = sshll.u32 %s1137_s15, 4  ;;  %s15_s19 = sshll.u32 %s1334_s0, 4  ;;  %s31_s16 = int_to_ptr.vmem [resolvable:$true] %s30_s16  ;;  %s16_s19 = int_to_ptr.hbm [resolvable:$true] %s15_s19 }
   0x4   :  { %s1138_s20 = smov 128   ;;  %s1139_s21 = smov 8  }
   0x5   :  { %36 = dma.hbm_to_vmem [thread:$0]  %s29_s14, 256, %s31_s16, [#allocation6], %s1138_s20, %s1138_s20, %s1139_s21  }
   0x6   :  { %s1140_s22 = smov [#allocation2]   ;;  %s41_s1 = sshll.u32 %s1336_s2, 4  ;;  %s42_s1 = int_to_ptr.hbm [resolvable:$true] %s41_s1 }
   0x7   :  { %s17_s23 = sshll.u32 %s1140_s22, 4  ;;  %s1141_s0 = smov [#allocation7]   ;;  %s18_s23 = int_to_ptr.vmem [resolvable:$true] %s17_s23 }
   0x8   :  { %23 = dma.hbm_to_vmem [thread:$0]  %s16_s19, 256, %s18_s23, [#allocation3], %s1138_s20, %s1138_s20, %s1139_s21  }
   0x9   :  { %s43_s26 = sshll.u32 %s1141_s0, 4  ;;  %s44_s26 = int_to_ptr.vmem [resolvable:$true] %s43_s26 }
   0xa   :  { %49 = dma.hbm_to_vmem [thread:$0]  %s42_s1, 3328, %s44_s26, [#allocation6], %s1138_s20, %s1138_s20, %s1139_s21  }
   0xb   :  { %1131 = dma.done.wait [#allocation3], 256  }
   0xc   :  { %1132 = vsyncadd [#allocation3], 4294967040 }
   0xd   :  { %1133 = dma.done.wait [#allocation6], 3584  }
   0xe   :  { %1134 = vsyncadd [#allocation6], 4294963712  ;;  %v71_v0 = vld [vmem:[#allocation7 + $0x18] sm:$0xff]  ;;  %v70_v1 = vld [vmem:[#allocation7 + $0x10] sm:$0xff]  ;;  %vm95_vm0 = vcmask 261120   ;;  %s1142_s2 = smov 120   ;;  %v155_v32 = vlaneseq }
   0xf   :  { %114 = vmatpush.msra.mxu0 %v71_v0  ;;  %v1190_v2 = vld [vmem:[#allocation2] sm:$0xff]  ;;  %v64_v3 = vld [vmem:[#allocation5] sm:$0xff]  ;;  %v69_v4 = vld [vmem:[#allocation7 + $0x8] sm:$0xff]  ;;  %s1143_s27 = smov 96   ;;  %s1144_s28 = smov 72   ;;  %vm206_vm1 = vcmask 64512  }
  0x10   :  { %v75_v5 = vld [vmem:[#allocation7 + $0x38] sm:$0xff]  ;;  %v74_v6 = vld [vmem:[#allocation7 + $0x30] sm:$0xff]  ;;  %v68_v7 = vld [vmem:[#allocation7] sm:$0xff]  ;;  %v66_v8 = vadd.f32 %v64_v3, %v1190_v2  ;;  %s1145_s29 = smov 88   ;;  %s1146_s30 = smov 80   ;;  %v156_v33 = vshrl.u32 %v155_v32, 7 }
  0x11   :  { %115 = vmatpush.msra.mxu0 %v70_v1  ;;  %144 = vmatpush.msra.mxu1 %v75_v5  ;;  %v1194_v9 = vld [vmem:[#allocation2 + $0x8] sm:$0xff]  ;;  %v65_v10 = vld [vmem:[#allocation5 + $0x8] sm:$0xff]  ;;  %v72_v13 = vld [vmem:[#allocation7 + $0x20] sm:$0xff]  ;;  %s1147_s4 = smov 112   ;;  %v183_v34 = vand.u32 127, %v155_v32  ;;  %vm238_vm3 = vcmask 130048  }
  0x12   :  { %v67_v11 = vadd.f32 %v65_v10, %v1194_v9  ;;  %v73_v12 = vld [vmem:[#allocation7 + $0x28] sm:$0xff]  ;;  %v1202_v14 = vld [vmem:[#allocation7 + $0xc0] sm:$0xff]  ;;  %v162_v35 = vand.u32 1, %v156_v33  ;;  %v157_v37 = vadd.s32 8, %v156_v33  ;;  %v1148_v38 = vmov -1e+30  }
  0x13   :  { %116 = vmatpush.msra.mxu0 %v69_v4  ;;  %145 = vmatpush.msra.mxu1 %v74_v6  ;;  %v94_v15 = vperm.slane %v1202_v14, 0  ;;  %v125_v21 = vperm.slane %v1202_v14, 1  ;;  %v76_v26 = vld [vmem:[#allocation7 + $0x40] sm:$0xff]  ;;  %v188_v36 = vand.u32 1, %v183_v34  ;;  %s1149_s5 = smov 104   ;;  %vm819_vm12 = vcmask 523264  }
  0x14   :  { %v169_v40 = vand.u32 1, %v157_v37  ;;  %s1151_s6 = smov [#allocation8]   ;;  %s909_s10 = sshll.u32 %s1337_s3, 4  ;;  %s910_s10 = int_to_ptr.hbm [resolvable:$true] %s909_s10 }
  0x15   :  { %117 = vmatpush.msra.mxu0 %v68_v7  ;;  %146 = vmatpush.msra.mxu1 %v73_v12  ;;  %vm196_vm2 = vcmp.eq.s32.totalorder %v162_v35, %v188_v36  ;;  %s907_s7 = sshll.u32 %s1151_s6, 4  ;;  %s908_s7 = int_to_ptr.vmem [resolvable:$true] %s907_s7 }
  0x16   :  { %923 = vmatmul.msk.f32.vlgmr.msra.gmra.mxu0 %vm95_vm0, %v66_v8  ;;  %v1224_v39 = vsel %vm196_vm2, 0.0, %v1148_v38  ;;  %vm197_vm4 = vcmp.eq.s32.totalorder %v169_v40, %v188_v36 }
  0x17   :  { %147 = vmatpush.msra.mxu1 %v72_v13  ;;  %v1228_v44 = vsel %vm197_vm4, 0.0, %v1148_v38 }
  0x18   :  { %925 = vmatmul.msk.f32.vlgmr.msra.gmra.mxu1 %vm95_vm0, %v1190_v2 }
  0x1e   :  { %924 = vmatmul.msk.f32.gmra.mxu0 %vm95_vm0, %v67_v11 }
  0x20   :  { %926 = vmatmul.msk.f32.gmra.mxu1 %vm95_vm0, %v1194_v9 }
  0x93   :  { %v119_v16 = vpop.f32.mrf.mxu0 }
  0x94   :  { %v1205_v17 = vadd.f32 %v119_v16, %v94_v15 }
  0x95   :  { %v149_v20 = vpop.f32.mrf.mxu1 }
  0x96   :  { %296 = vrot.lane.b32.xlu2 %v1205_v17, %s1142_s2  ;;  %v150_v23 = vadd.f32 %v149_v20, %v125_v21 }
  0x9b   :  { %v122_v18 = vpop.f32.mrf.mxu0 }
  0x9c   :  { %v123_v19 = vadd.f32 %v122_v18, %v94_v15 }
  0x9d   :  { %v152_v22 = vpop.f32.mrf.mxu1 }
  0x9e   :  { %204 = vrot.lane.b32.xlu0 %v123_v19, %s1143_s27  ;;  %595 = vrot.lane.b32.xlu2 %v1205_v17, %s1144_s28  ;;  %v153_v24 = vadd.f32 %v152_v22, %v125_v21 }
  0xa0   :  { %285 = vmatpush.msra.mxu3 %v153_v24  ;;  %v1237_v48 = vpack.i.bf16 %v150_v23, %v153_v24 }
  0xa2   :  { %286 = vmatpush.msra.mxu3 %v150_v23 }
  0xa6   :  { %202 = vrot.lane.b32.xlu0 %v1205_v17, %s1143_s27 }
  0xae   :  { %302 = vrot.lane.b32.xlu0 %v123_v19, %s1145_s29 }
  0xb6   :  { %597 = vrot.lane.b32.xlu0 %v123_v19, %s1144_s28 }
  0xbe   :  { %298 = vrot.lane.b32.xlu0 %v123_v19, %s1142_s2 }
  0xc6   :  { %464 = vrot.lane.b32.xlu0 %v123_v19, %s1146_s30 }
  0xce   :  { %462 = vrot.lane.b32.xlu0 %v1205_v17, %s1146_s30 }
  0xd6   :  { %460 = vrot.lane.b32.xlu0 %v123_v19, %s1147_s4 }
  0xde   :  { %979 = vrot.lane.b32.xlu0 %v1237_v48, %s1142_s2 }
  0xf0   :  { %v297_v29 = vpop.permute.xlu2 %296 }
  0xf8   :  { %v596_v31 = vpop.permute.xlu2 %595 }
 0x110   :  { %v205_v25 = vpop.permute.xlu0 %204 }
 0x111   :  { %927 = vmatpush.xpose.msk.msra.mxu2 %vm206_vm1, %v205_v25 }
 0x118   :  { %v203_v27 = vpop.permute.xlu0 %202 }
 0x119   :  { %928 = vmatpush.xpose.msk.msra.mxu2 %vm206_vm1, %v203_v27 }
 0x11c   :  { %929 = vmatmul.msk.f32.vlgmr.msra.gmra.mxu2 %vm206_vm1, %v1205_v17 }
 0x11d   :  { %450 = vmatpush.msrb.mxu2 %v76_v26 }
 0x120   :  { %v303_v28 = vpop.permute.xlu0 %302 }
 0x121   :  { %933 = vmatpush.xpose.msk.msrb.mxu3 %vm206_vm1, %v303_v28 }
 0x124   :  { %930 = vmatmul.msk.f32.gmra.mxu2 %vm206_vm1, %v123_v19 }
 0x128   :  { %v598_v30 = vpop.permute.xlu0 %597 }
 0x129   :  { %951 = vmatpush.xpose.msk.msra.mxu2 %vm206_vm1, %v598_v30 }
 0x12d   :  { %952 = vmatpush.xpose.msk.msra.mxu2 %vm206_vm1, %v596_v31 }
 0x130   :  { %v299_v57 = vpop.permute.xlu0 %298 }
 0x138   :  { %v465_v60 = vpop.permute.xlu0 %464 }
 0x140   :  { %v463_v62 = vpop.permute.xlu0 %462 }
 0x148   :  { %v461_v63 = vpop.permute.xlu0 %460 }
 0x150   :  { %v980_v0 = vpop.permute.xlu0 %979 }
 0x151   :  { %v981_v1 = vunpack.i.l.bf16 %v980_v0  ;;  %v982_v3 = vunpack.i.h.bf16 %v980_v0  ;;  %v77_v0 = vld [vmem:[#allocation7 + $0x48] sm:$0xff] }
 0x152   :  { %421 = vmatpush.msrb.mxu1 %v77_v0 }
 0x153   :  { %389 = vmatpush.msrb.mxu0 %v981_v1 }
 0x155   :  { %390 = vmatpush.msrb.mxu0 %v982_v3 }
 0x19f   :  { %v232_v41 = vpop.f32.mrf.mxu2 }
 0x1a0   :  { %v233_v42 = vadd.f32 %v232_v41, %v1224_v39 }
 0x1a2   :  { %v239_v43 = vsel %vm238_vm3, %v233_v42, -inf }
 0x1a3   :  { %240 = vmax.xlane.f32.xlu1 %v239_v43 }
 0x1a7   :  { %v235_v45 = vpop.f32.mrf.mxu2 }
 0x1a8   :  { %v236_v46 = vadd.f32 %v235_v45, %v1228_v44 }
 0x1aa   :  { %v242_v47 = vsel %vm238_vm3, %v236_v46, -inf }
 0x1ab   :  { %243 = vmax.xlane.f32.xlu1 %v242_v47 }
 0x1c4   :  { %300 = vrot.lane.b32.xlu1 %v1205_v17, %s1145_s29 }
 0x1cc   :  { %591 = vrot.lane.b32.xlu1 %v1205_v17, %s1149_s5 }
 0x1d4   :  { %593 = vrot.lane.b32.xlu1 %v123_v19, %s1149_s5 }
 0x216   :  { %v241_v49 = vpop.xlane.xlu1 %240 }
 0x217   :  { %v245_v50 = vsub.f32 %v233_v42, %v241_v49 }
 0x219   :  { %v247_v51 = vmul.f32 1.442695, %v245_v50 }
 0x21b   :  { %993 = vpow2.f32 %v247_v51 }
 0x21e   :  { %v244_v52 = vpop.xlane.xlu1 %243 }
 0x21f   :  { %v246_v53 = vsub.f32 %v236_v46, %v244_v52 }
 0x221   :  { %v994_v54 = vpop.eup %993  ;;  %v249_v55 = vmul.f32 1.442695, %v246_v53 }
 0x222   :  { %931 = vmatmul.msk.f32.vlgmr.msra.gmra.mxu3 %vm238_vm3, %v994_v54  ;;  %v251_v56 = vsel %vm238_vm3, %v994_v54, 0.0 }
 0x223   :  { %995 = vpow2.f32 %v249_v55  ;;  %252 = vadd.xlane.f32.xlu2 %v251_v56 }
 0x229   :  { %v996_v58 = vpop.eup %995 }
 0x22a   :  { %932 = vmatmul.msk.f32.gmra.mxu3 %vm238_vm3, %v996_v58  ;;  %v254_v59 = vsel %vm238_vm3, %v996_v58, 0.0 }
 0x22b   :  { %255 = vadd.xlane.f32.xlu2 %v254_v59 }
 0x236   :  { %v301_v61 = vpop.permute.xlu1 %300 }
 0x237   :  { %934 = vmatpush.xpose.msk.msrb.mxu3 %vm206_vm1, %v301_v61 }
 0x23a   :  { %935 = vmatmul.msk.f32.vlgmr.msrb.gmra.mxu3 %vm206_vm1, %v297_v29 }
 0x23b   :  { %943 = vmatpush.xpose.msk.msra.mxu3 %vm206_vm1, %v465_v60 }
 0x23e   :  { %v592_v21 = vpop.permute.xlu1 %591 }
 0x23f   :  { %944 = vmatpush.xpose.msk.msra.mxu3 %vm206_vm1, %v463_v62 }
 0x242   :  { %936 = vmatmul.msk.f32.gmra.mxu3 %vm206_vm1, %v299_v57 }
 0x243   :  { %458 = vrot.lane.b32.xlu2 %v1205_v17, %s1147_s4 }
 0x246   :  { %v594_v24 = vpop.permute.xlu1 %593 }
 0x296   :  { %v253_v4 = vpop.xlane.xlu2 %252 }
 0x297   :  { %997 = vrcp.f32 %v253_v4 }
 0x29d   :  { %v998_v5 = vpop.eup %997 }
 0x29e   :  { %v259_v6 = vmul.f32 %v998_v5, %v253_v4  ;;  %v256_v7 = vpop.xlane.xlu2 %255 }
 0x29f   :  { %999 = vrcp.f32 %v256_v7 }
 0x2a0   :  { %v261_v8 = vsub.f32 2.0, %v259_v6 }
 0x2a2   :  { %v263_v10 = vmul.f32 %v998_v5, %v261_v8 }
 0x2a5   :  { %v1000_v11 = vpop.eup %999  ;;  %v288_v12 = vpop.f32.mrf.mxu3 }
 0x2a6   :  { %v260_v13 = vmul.f32 %v1000_v11, %v256_v7  ;;  %v294_v15 = vmul.f32 %v288_v12, %v263_v10  ;;  %v459_v16 = vpop.permute.xlu2 %458 }
 0x2a7   :  { %945 = vmatmul.msk.f32.vlgmr.msra.gmra.mxu3 %vm206_vm1, %v459_v16 }
 0x2a8   :  { %v262_v17 = vsub.f32 2.0, %v260_v13  ;;  %941 = vmatmul.msk.f32.vlgmr.msrb.gmra.mxu2 %vm206_vm1, %v294_v15 }
 0x2aa   :  { %v264_v18 = vmul.f32 %v1000_v11, %v262_v17 }
 0x2ad   :  { %v291_v19 = vpop.f32.mrf.mxu3 }
 0x2ae   :  { %v295_v20 = vmul.f32 %v291_v19, %v264_v18 }
 0x2af   :  { %946 = vmatmul.msk.f32.gmra.mxu3 %vm206_vm1, %v461_v63 }
 0x2b0   :  { %942 = vmatmul.msk.f32.gmra.mxu2 %vm206_vm1, %v295_v20 }
 0x2b8   :  { %953 = vmatmul.msk.f32.vlgmr.msra.gmra.mxu2 %vm206_vm1, %v592_v21 }
 0x2bd   :  { %v329_v22 = vpop.f32.mrf.mxu3 }
 0x2be   :  { %v330_v23 = vadd.f32 %v329_v22, %v1224_v39 }
 0x2c0   :  { %954 = vmatmul.msk.f32.gmra.mxu2 %vm206_vm1, %v594_v24  ;;  %v335_v25 = vsel %vm238_vm3, %v330_v23, -inf }
 0x2c1   :  { %336 = vmax.xlane.f32.xlu2 %v335_v25 }
 0x2c5   :  { %v332_v26 = vpop.f32.mrf.mxu3 }
 0x2c6   :  { %v333_v27 = vadd.f32 %v332_v26, %v1228_v44 }
 0x2c8   :  { %v338_v28 = vsel %vm238_vm3, %v333_v27, -inf }
 0x2c9   :  { %339 = vmax.xlane.f32.xlu1 %v338_v28 }
 0x32a   :  { %v491_v29 = vpop.f32.mrf.mxu3 }
 0x32b   :  { %v492_v30 = vadd.f32 %v491_v29, %v1224_v39  ;;  %v1263_v31 = vpop.f32.mrf.mxu2 }
 0x32d   :  { %v497_v32 = vsel %vm238_vm3, %v492_v30, -inf }
 0x32e   :  { %498 = vmax.xlane.f32.xlu2 %v497_v32 }
 0x333   :  { %v1266_v33 = vpop.f32.mrf.mxu2 }
 0x334   :  { %v337_v34 = vpop.xlane.xlu2 %336 }
 0x335   :  { %v341_v35 = vsub.f32 %v330_v23, %v337_v34 }
 0x337   :  { %v343_v36 = vmul.f32 1.442695, %v341_v35  ;;  %v79_v35 = vld [vmem:[#allocation7 + $0x58] sm:$0xff] }
 0x339   :  { %1001 = vpow2.f32 %v343_v36  ;;  %v78_v36 = vld [vmem:[#allocation7 + $0x50] sm:$0xff] }
 0x33a   :  { %581 = vmatpush.msra.mxu1 %v78_v36 }
 0x33b   :  { %v624_v37 = vpop.f32.mrf.mxu2 }
 0x33c   :  { %v625_v38 = vadd.f32 %v624_v37, %v1224_v39  ;;  %v340_v40 = vpop.xlane.xlu1 %339  ;;  %v494_v39 = vpop.f32.mrf.mxu3 }
 0x33d   :  { %v342_v41 = vsub.f32 %v333_v27, %v340_v40  ;;  %v495_v51 = vadd.f32 %v494_v39, %v1228_v44 }
 0x33e   :  { %v630_v42 = vsel %vm238_vm3, %v625_v38, -inf }
 0x33f   :  { %v1002_v43 = vpop.eup %1001  ;;  %v345_v45 = vmul.f32 1.442695, %v342_v41  ;;  %631 = vmax.xlane.f32.xlu0 %v630_v42  ;;  %v500_v52 = vsel %vm238_vm3, %v495_v51, -inf }
 0x340   :  { %937 = vmatmul.msk.f32.vlgmr.msrb.gmra.mxu0 %vm238_vm3, %v1002_v43  ;;  %v347_v53 = vsel %vm238_vm3, %v1002_v43, 0.0 }
 0x341   :  { %1003 = vpow2.f32 %v345_v45 }
 0x343   :  { %v627_v46 = vpop.f32.mrf.mxu2 }
 0x344   :  { %v628_v47 = vadd.f32 %v627_v46, %v1228_v44 }
 0x346   :  { %984 = vrot.lane.b32.xlu2 %v1237_v48, %s1149_s5  ;;  %v633_v49 = vsel %vm238_vm3, %v628_v47, -inf }
 0x347   :  { %v1004_v50 = vpop.eup %1003  ;;  %634 = vmax.xlane.f32.xlu1 %v633_v49 }
 0x348   :  { %938 = vmatmul.msk.f32.gmra.mxu0 %vm238_vm3, %v1004_v50  ;;  %v350_v54 = vsel %vm238_vm3, %v1004_v50, 0.0 }
 0x34f   :  { %501 = vmax.xlane.f32.xlu1 %v500_v52 }
 0x353   :  { %989 = vrot.lane.b32.xlu0 %v1237_v48, %s1147_s4 }
 0x357   :  { %348 = vadd.xlane.f32.xlu1 %v347_v53 }
 0x35f   :  { %351 = vadd.xlane.f32.xlu1 %v350_v54 }
 0x3a1   :  { %v499_v55 = vpop.xlane.xlu2 %498 }
 0x3a2   :  { %v503_v56 = vsub.f32 %v492_v30, %v499_v55 }
 0x3a4   :  { %v505_v57 = vmul.f32 1.442695, %v503_v56 }
 0x3a6   :  { %1005 = vpow2.f32 %v505_v57 }
 0x3a9   :  { %v985_v58 = vpop.permute.xlu2 %984 }
 0x3aa   :  { %v986_v59 = vunpack.i.l.bf16 %v985_v58  ;;  %v987_v44 = vunpack.i.h.bf16 %v985_v58 }
 0x3ac   :  { %v1006_v60 = vpop.eup %1005  ;;  %682 = vmatpush.msrb.mxu3 %v986_v59 }
 0x3ad   :  { %v509_v61 = vsel %vm238_vm3, %v1006_v60, 0.0 }
 0x3ae   :  { %510 = vadd.xlane.f32.xlu2 %v509_v61  ;;  %683 = vmatpush.msrb.mxu3 %v987_v44 }
 0x3b2   :  { %v632_v48 = vpop.xlane.xlu0 %631 }
 0x3b3   :  { %v636_v62 = vsub.f32 %v625_v38, %v632_v48 }
 0x3b5   :  { %v638_v63 = vmul.f32 1.442695, %v636_v62 }
 0x3b7   :  { %1007 = vpow2.f32 %v638_v63 }
 0x3ba   :  { %v635_v1 = vpop.xlane.xlu1 %634 }
 0x3bb   :  { %v637_v3 = vsub.f32 %v628_v47, %v635_v1 }
 0x3bd   :  { %v1008_v4 = vpop.eup %1007  ;;  %v640_v5 = vmul.f32 1.442695, %v637_v3  ;;  %v392_v24 = vpop.f32.mrf.mxu0 }
 0x3be   :  { %955 = vmatmul.msk.f32.vlgmr.msrb.gmra.mxu3 %vm238_vm3, %v1008_v4  ;;  %v642_v6 = vsel %vm238_vm3, %v1008_v4, 0.0 }
 0x3bf   :  { %1009 = vpow2.f32 %v640_v5  ;;  %643 = vadd.xlane.f32.xlu1 %v642_v6 }
 0x3c2   :  { %v502_v7 = vpop.xlane.xlu1 %501 }
 0x3c3   :  { %v504_v8 = vsub.f32 %v495_v51, %v502_v7 }
 0x3c5   :  { %v1010_v10 = vpop.eup %1009  ;;  %v507_v11 = vmul.f32 1.442695, %v504_v8  ;;  %v990_v12 = vpop.permute.xlu0 %989  ;;  %v724_v8 = vperm.slane %v1202_v14, 2 }
 0x3c6   :  { %v991_v13 = vunpack.i.l.bf16 %v990_v12  ;;  %956 = vmatmul.msk.f32.gmra.mxu3 %vm238_vm3, %v1010_v10  ;;  %v645_v15 = vsel %vm238_vm3, %v1010_v10, 0.0  ;;  %v992_v16 = vunpack.i.h.bf16 %v990_v12  ;;  %v395_v32 = vpop.f32.mrf.mxu0 }
 0x3c7   :  { %1011 = vpow2.f32 %v507_v11  ;;  %646 = vadd.xlane.f32.xlu1 %v645_v15 }
 0x3c8   :  { %549 = vmatpush.msra.mxu0 %v991_v13 }
 0x3ca   :  { %v349_v17 = vpop.xlane.xlu1 %348  ;;  %550 = vmatpush.msra.mxu0 %v992_v16 }
 0x3cb   :  { %1013 = vrcp.f32 %v349_v17  ;;  %947 = vmatmul.msk.f32.vlgmr.msra.gmra.mxu0 %vm238_vm3, %v1006_v60 }
 0x3cc   :  { %714 = vmatpush.msrb.mxu0 %v79_v35 }
 0x3cd   :  { %v1012_v18 = vpop.eup %1011 }
 0x3ce   :  { %v512_v19 = vsel %vm238_vm3, %v1012_v18, 0.0 }
 0x3cf   :  { %513 = vadd.xlane.f32.xlu0 %v512_v19 }
 0x3d1   :  { %v1014_v20 = vpop.eup %1013 }
 0x3d2   :  { %v355_v21 = vmul.f32 %v1014_v20, %v349_v17  ;;  %v352_v22 = vpop.xlane.xlu1 %351 }
 0x3d3   :  { %1015 = vrcp.f32 %v352_v22  ;;  %948 = vmatmul.msk.f32.gmra.mxu0 %vm238_vm3, %v1012_v18 }
 0x3d4   :  { %v357_v23 = vsub.f32 2.0, %v355_v21 }
 0x3d6   :  { %v359_v25 = vmul.f32 %v1014_v20, %v357_v23 }
 0x3d8   :  { %v398_v26 = vmul.f32 %v392_v24, %v359_v25 }
 0x3d9   :  { %v1016_v27 = vpop.eup %1015 }
 0x3da   :  { %v356_v28 = vmul.f32 %v1016_v27, %v352_v22  ;;  %939 = vmatmul.msk.f32.vlgmr.msrb.gmra.mxu1 %vm206_vm1, %v398_v26  ;;  %v1150_v22 = vmov 32.0  }
 0x3dc   :  { %v358_v29 = vsub.f32 2.0, %v356_v28 }
 0x3de   :  { %v360_v30 = vmul.f32 %v1016_v27, %v358_v29 }
 0x3e0   :  { %v399_v34 = vmul.f32 %v395_v32, %v360_v30 }
 0x3e2   :  { %940 = vmatmul.msk.f32.gmra.mxu1 %vm206_vm1, %v399_v34 }
 0x421   :  { %v511_v38 = vpop.xlane.xlu2 %510 }
 0x432   :  { %v644_v37 = vpop.xlane.xlu1 %643 }
 0x433   :  { %1017 = vrcp.f32 %v644_v37 }
 0x434   :  { %1019 = vrcp.f32 %v511_v38 }
 0x439   :  { %v1018_v40 = vpop.eup %1017 }
 0x43a   :  { %v650_v41 = vmul.f32 %v1018_v40, %v644_v37  ;;  %v647_v42 = vpop.xlane.xlu1 %646  ;;  %v1020_v43 = vpop.eup %1019 }
 0x43b   :  { %1021 = vrcp.f32 %v647_v42  ;;  %v517_v46 = vmul.f32 %v1020_v43, %v511_v38  ;;  %v83_v38 = vld [vmem:[#allocation7 + $0x78] sm:$0xff] }
 0x43c   :  { %v652_v45 = vsub.f32 2.0, %v650_v41  ;;  %805 = vmatpush.msrb.mxu1 %v83_v38  ;;  %v81_v41 = vld [vmem:[#allocation7 + $0x68] sm:$0xff] }
 0x43d   :  { %v519_v53 = vsub.f32 2.0, %v517_v46 }
 0x43e   :  { %v654_v47 = vmul.f32 %v1018_v40, %v652_v45  ;;  %v82_v40 = vld [vmem:[#allocation7 + $0x70] sm:$0xff] }
 0x43f   :  { %v521_v55 = vmul.f32 %v1020_v43, %v519_v53  ;;  %806 = vmatpush.msrb.mxu1 %v82_v40 }
 0x441   :  { %v1022_v49 = vpop.eup %1021  ;;  %v685_v50 = vpop.f32.mrf.mxu3  ;;  %807 = vmatpush.msrb.mxu1 %v81_v41 }
 0x442   :  { %v651_v39 = vmul.f32 %v1022_v49, %v647_v42  ;;  %v691_v51 = vmul.f32 %v685_v50, %v654_v47  ;;  %v514_v52 = vpop.xlane.xlu0 %513  ;;  %v80_v42 = vld [vmem:[#allocation7 + $0x60] sm:$0xff]  ;;  %v91_v47 = vld [vmem:[#allocation7 + $0xb8] sm:$0xff]  ;;  %v89_v50 = vld [vmem:[#allocation7 + $0xa8] sm:$0xff] }
 0x443   :  { %1023 = vrcp.f32 %v514_v52  ;;  %808 = vmatpush.msrb.mxu1 %v80_v42  ;;  %834 = vmatpush.msrb.mxu2 %v91_v47 }
 0x444   :  { %v653_v54 = vsub.f32 2.0, %v651_v39  ;;  %957 = vmatmul.msk.f32.vlgmr.msrb.gmra.mxu0 %vm206_vm1, %v691_v51  ;;  %1025 = vrcp.f32 %v1150_v22 }
 0x446   :  { %v655_v57 = vmul.f32 %v1022_v49, %v653_v54  ;;  %v90_v49 = vld [vmem:[#allocation7 + $0xb0] sm:$0xff] }
 0x447   :  { %835 = vmatpush.msrb.mxu2 %v90_v49 }
 0x448   :  { %v552_v56 = vpop.f32.mrf.mxu0 }
 0x449   :  { %v1024_v58 = vpop.eup %1023  ;;  %v558_v59 = vmul.f32 %v552_v56, %v521_v55  ;;  %v688_v60 = vpop.f32.mrf.mxu3  ;;  %836 = vmatpush.msrb.mxu2 %v89_v50  ;;  %v87_v55 = vld [vmem:[#allocation7 + $0x98] sm:$0xff] }
 0x44a   :  { %v518_v44 = vmul.f32 %v1024_v58, %v514_v52  ;;  %v692_v61 = vmul.f32 %v688_v60, %v655_v57  ;;  %v1026_v23 = vpop.eup %1025  ;;  %v88_v52 = vld [vmem:[#allocation7 + $0xa0] sm:$0xff] }
 0x44b   :  { %949 = vmatmul.msk.f32.vlgmr.msra.gmra.mxu1 %vm206_vm1, %v558_v59  ;;  %v736_v24 = vmul.f32 32.0, %v1026_v23  ;;  %vm740_vm5 = vweird.f32 %v1026_v23  ;;  %837 = vmatpush.msrb.mxu2 %v88_v52 }
 0x44c   :  { %v520_v48 = vsub.f32 2.0, %v518_v44  ;;  %958 = vmatmul.msk.f32.gmra.mxu0 %vm206_vm1, %v692_v61 }
 0x44d   :  { %838 = vmatpush.msrb.mxu2 %v87_v55 }
 0x44e   :  { %v522_v62 = vmul.f32 %v1024_v58, %v520_v48  ;;  %v780_v48 = vperm.slane %v1202_v14, 5 }
 0x450   :  { %v555_v63 = vpop.f32.mrf.mxu0 }
 0x451   :  { %v559_v0 = vmul.f32 %v555_v63, %v522_v62 }
 0x453   :  { %950 = vmatmul.msk.f32.gmra.mxu1 %vm206_vm1, %v559_v0 }
 0x457   :  { %v423_v1 = vpop.f32.mrf.mxu1 }
 0x458   :  { %v453_v4 = vadd.f32 %v1263_v31, %v423_v1  ;;  %v783_v1 = vperm.slane %v1202_v14, 6 }
 0x45f   :  { %v426_v3 = vpop.f32.mrf.mxu1 }
 0x460   :  { %v456_v12 = vadd.f32 %v1266_v33, %v426_v3  ;;  %v737_v33 = vsub.f32 1.0, %v736_v24 }
 0x462   :  { %v738_v25 = vmul.f32 %v1026_v23, %v737_v33 }
 0x4c1   :  { %v716_v5 = vpop.f32.mrf.mxu0 }
 0x4c8   :  { %v583_v6 = vpop.f32.mrf.mxu1 }
 0x4c9   :  { %v589_v7 = vadd.f32 %v583_v6, %v453_v4  ;;  %v719_v18 = vpop.f32.mrf.mxu0 }
 0x4cb   :  { %v722_v10 = vadd.f32 %v716_v5, %v589_v7 }
 0x4cd   :  { %v725_v11 = vadd.f32 %v724_v8, %v722_v10 }
 0x4cf   :  { %v727_v13 = vadd.f32 %v725_v11, %v1190_v2  ;;  %v739_v2 = vadd.f32 %v1026_v23, %v738_v25 }
 0x4d0   :  { %v586_v15 = vpop.f32.mrf.mxu1 }
 0x4d1   :  { %v590_v16 = vadd.f32 %v586_v15, %v456_v12  ;;  %v729_v17 = vsel %vm95_vm0, %v727_v13, 0.0  ;;  %v1303_v26 = vsel %vm740_vm5, %v1026_v23, %v739_v2  ;;  %v85_v15 = vld [vmem:[#allocation7 + $0x88] sm:$0xff]  ;;  %v818_v23 = vperm.slane %v1202_v14, 4 }
 0x4d2   :  { %730 = vadd.xlane.f32.xlu1 %v729_v17  ;;  %v786_v17 = vperm.slane %v1202_v14, 3 }
 0x4d3   :  { %v723_v19 = vadd.f32 %v719_v18, %v590_v16  ;;  %v84_v16 = vld [vmem:[#allocation7 + $0x80] sm:$0xff] }
 0x4d5   :  { %v726_v20 = vadd.f32 %v724_v8, %v723_v19 }
 0x4d7   :  { %v728_v31 = vadd.f32 %v726_v20, %v1194_v9 }
 0x4d9   :  { %v732_v21 = vsel %vm95_vm0, %v728_v31, 0.0 }
 0x4da   :  { %733 = vadd.xlane.f32.xlu1 %v732_v21 }
 0x545   :  { %v731_v27 = vpop.xlane.xlu1 %730 }
 0x546   :  { %v742_v28 = vmul.f32 %v1303_v26, %v731_v27 }
 0x548   :  { %v744_v29 = vsub.f32 %v727_v13, %v742_v28  ;;  %v86_v13 = vld [vmem:[#allocation7 + $0x90] sm:$0xff] }
 0x549   :  { %839 = vmatpush.msrb.mxu2 %v86_v13 }
 0x54a   :  { %v746_v30 = vmul.f32 %v744_v29, %v744_v29 }
 0x54b   :  { %840 = vmatpush.msrb.mxu2 %v85_v15 }
 0x54c   :  { %v748_v9 = vsel %vm95_vm0, %v746_v30, 0.0 }
 0x54d   :  { %749 = vadd.xlane.f32.xlu1 %v748_v9  ;;  %v734_v32 = vpop.xlane.xlu1 %733  ;;  %841 = vmatpush.msrb.mxu2 %v84_v16 }
 0x54e   :  { %v743_v34 = vmul.f32 %v1303_v26, %v734_v32 }
 0x550   :  { %v745_v35 = vsub.f32 %v728_v31, %v743_v34 }
 0x552   :  { %v747_v36 = vmul.f32 %v745_v35, %v745_v35 }
 0x554   :  { %v751_v37 = vsel %vm95_vm0, %v747_v36, 0.0 }
 0x555   :  { %752 = vadd.xlane.f32.xlu2 %v751_v37 }
 0x5c0   :  { %v750_v43 = vpop.xlane.xlu1 %749 }
 0x5c1   :  { %v754_v45 = vmul.f32 %v750_v43, %v1303_v26 }
 0x5c3   :  { %v756_v46 = vadd.f32 1e-05, %v754_v45 }
 0x5c5   :  { %1027 = vrsqrt.f32 %v756_v46  ;;  %vm764_vm7 = vweird.f32 %v756_v46 }
 0x5c8   :  { %v753_v39 = vpop.xlane.xlu2 %752 }
 0x5c9   :  { %v755_v51 = vmul.f32 %v753_v39, %v1303_v26 }
 0x5cb   :  { %v1028_v53 = vpop.eup %1027  ;;  %v757_v54 = vadd.f32 1e-05, %v755_v51 }
 0x5cc   :  { %v759_v56 = vmul.f32 %v1028_v53, %v756_v46  ;;  %vm765_vm6 = vweird.f32 %v1028_v53 }
 0x5cd   :  { %1029 = vrsqrt.f32 %v757_v54  ;;  %vm766_vm8 = vmor %vm764_vm7, %vm765_vm6  ;;  %vm774_vm10 = vweird.f32 %v757_v54 }
 0x5ce   :  { %v760_v57 = vmul.f32 %v1028_v53, %v759_v56 }
 0x5d0   :  { %v761_v58 = vmul.f32 0.5, %v760_v57 }
 0x5d2   :  { %v762_v59 = vsub.f32 1.5, %v761_v58  ;;  %v93_v58 = vld [vmem:[#allocation7 + $0xc8] sm:$0xff] }
 0x5d3   :  { %v1030_v60 = vpop.eup %1029 }
 0x5d4   :  { %v763_v44 = vmul.f32 %v1028_v53, %v762_v59  ;;  %v769_v61 = vmul.f32 %v1030_v60, %v757_v54  ;;  %vm775_vm9 = vweird.f32 %v1030_v60  ;;  %v895_v59 = vperm.slane %v1202_v14, 7 }
 0x5d5   :  { %vm776_vm11 = vmor %vm774_vm10, %vm775_vm9 }
 0x5d6   :  { %v767_v62 = vsel %vm766_vm8, %v1028_v53, %v763_v44  ;;  %v770_v63 = vmul.f32 %v1030_v60, %v769_v61 }
 0x5d7   :  { %v778_v0 = vmul.f32 %v767_v62, %v744_v29 }
 0x5d8   :  { %v771_v3 = vmul.f32 0.5, %v770_v63 }
 0x5d9   :  { %v781_v4 = vmul.f32 %v780_v48, %v778_v0 }
 0x5da   :  { %v772_v5 = vsub.f32 1.5, %v771_v3 }
 0x5db   :  { %v784_v6 = vadd.f32 %v783_v1, %v781_v4 }
 0x5dc   :  { %v773_v7 = vmul.f32 %v1030_v60, %v772_v5 }
 0x5dd   :  { %959 = vmatmul.msk.f32.vlgmr.msrb.gmra.mxu1 %vm95_vm0, %v784_v6 }
 0x5de   :  { %v777_v8 = vsel %vm776_vm11, %v1030_v60, %v773_v7 }
 0x5df   :  { %v779_v10 = vmul.f32 %v777_v8, %v745_v35 }
 0x5e1   :  { %v782_v11 = vmul.f32 %v780_v48, %v779_v10 }
 0x5e3   :  { %v785_v12 = vadd.f32 %v783_v1, %v782_v11 }
 0x5e5   :  { %960 = vmatmul.msk.f32.gmra.mxu1 %vm95_vm0, %v785_v12 }
 0x65a   :  { %v810_v18 = vpop.f32.mrf.mxu1 }
 0x65b   :  { %v811_v19 = vadd.f32 %v810_v18, %v786_v17 }
 0x65d   :  { %v816_v20 = vmax.f32 %v811_v19, 0.0 }
 0x65f   :  { %961 = vmatmul.msk.f32.vlgmr.msrb.gmra.mxu2 %vm819_vm12, %v816_v20 }
 0x662   :  { %v813_v31 = vpop.f32.mrf.mxu1 }
 0x663   :  { %v814_v21 = vadd.f32 %v813_v31, %v786_v17 }
 0x665   :  { %v817_v22 = vmax.f32 %v814_v21, 0.0 }
 0x667   :  { %962 = vmatmul.msk.f32.gmra.mxu2 %vm819_vm12, %v817_v22 }
 0x6e2   :  { %v843_v24 = vpop.f32.mrf.mxu2 }
 0x6e3   :  { %v844_v33 = vadd.f32 %v843_v24, %v818_v23 }
 0x6e5   :  { %v849_v25 = vadd.f32 %v844_v33, %v784_v6 }
 0x6e7   :  { %v851_v2 = vsel %vm95_vm0, %v849_v25, 0.0 }
 0x6e8   :  { %852 = vadd.xlane.f32.xlu1 %v851_v2 }
 0x6ea   :  { %v846_v27 = vpop.f32.mrf.mxu2 }
 0x6eb   :  { %v847_v28 = vadd.f32 %v846_v27, %v818_v23 }
 0x6ed   :  { %v850_v29 = vadd.f32 %v847_v28, %v785_v12 }
 0x6ef   :  { %v854_v30 = vsel %vm95_vm0, %v850_v29, 0.0 }
 0x6f0   :  { %855 = vadd.xlane.f32.xlu0 %v854_v30 }
 0x75b   :  { %v853_v9 = vpop.xlane.xlu1 %852 }
 0x75c   :  { %v857_v32 = vmul.f32 %v853_v9, %v1303_v26 }
 0x75e   :  { %v859_v34 = vsub.f32 %v849_v25, %v857_v32 }
 0x760   :  { %v861_v35 = vmul.f32 %v859_v34, %v859_v34 }
 0x762   :  { %v863_v36 = vsel %vm95_vm0, %v861_v35, 0.0 }
 0x763   :  { %v856_v37 = vpop.xlane.xlu0 %855  ;;  %864 = vadd.xlane.f32.xlu2 %v863_v36 }
 0x764   :  { %v858_v38 = vmul.f32 %v856_v37, %v1303_v26 }
 0x766   :  { %v860_v40 = vsub.f32 %v850_v29, %v858_v38 }
 0x768   :  { %v862_v41 = vmul.f32 %v860_v40, %v860_v40 }
 0x76a   :  { %v866_v42 = vsel %vm95_vm0, %v862_v41, 0.0 }
 0x76b   :  { %867 = vadd.xlane.f32.xlu1 %v866_v42 }
 0x7d6   :  { %v865_v43 = vpop.xlane.xlu2 %864 }
 0x7d7   :  { %v869_v45 = vmul.f32 %v865_v43, %v1303_v26 }
 0x7d9   :  { %v871_v46 = vadd.f32 1e-05, %v869_v45 }
 0x7db   :  { %1031 = vrsqrt.f32 %v871_v46  ;;  %vm879_vm14 = vweird.f32 %v871_v46 }
 0x7de   :  { %v868_v47 = vpop.xlane.xlu1 %867 }
 0x7df   :  { %v870_v49 = vmul.f32 %v868_v47, %v1303_v26  ;;  %v898_v26 = vperm.slane %v93_v58, 0 }
 0x7e1   :  { %v1032_v50 = vpop.eup %1031  ;;  %v872_v39 = vadd.f32 1e-05, %v870_v49 }
 0x7e2   :  { %v874_v51 = vmul.f32 %v1032_v50, %v871_v46  ;;  %vm880_vm13 = vweird.f32 %v1032_v50 }
 0x7e3   :  { %1033 = vrsqrt.f32 %v872_v39  ;;  %vm881_vm15 = vmor %vm879_vm14, %vm880_vm13  ;;  %vm889_vm2 = vweird.f32 %v872_v39 }
 0x7e4   :  { %v875_v52 = vmul.f32 %v1032_v50, %v874_v51 }
 0x7e6   :  { %v876_v53 = vmul.f32 0.5, %v875_v52 }
 0x7e8   :  { %v877_v54 = vsub.f32 1.5, %v876_v53 }
 0x7e9   :  { %v1034_v55 = vpop.eup %1033 }
 0x7ea   :  { %v878_v56 = vmul.f32 %v1032_v50, %v877_v54  ;;  %v884_v57 = vmul.f32 %v1034_v55, %v872_v39  ;;  %vm890_vm1 = vweird.f32 %v1034_v55 }
 0x7eb   :  { %vm891_vm3 = vmor %vm889_vm2, %vm890_vm1 }
 0x7ec   :  { %v882_v60 = vsel %vm881_vm15, %v1032_v50, %v878_v56  ;;  %v885_v44 = vmul.f32 %v1034_v55, %v884_v57 }
 0x7ed   :  { %v893_v61 = vmul.f32 %v882_v60, %v859_v34 }
 0x7ee   :  { %v886_v48 = vmul.f32 0.5, %v885_v44 }
 0x7ef   :  { %v896_v62 = vmul.f32 %v895_v59, %v893_v61 }
 0x7f0   :  { %v887_v63 = vsub.f32 1.5, %v886_v48 }
 0x7f1   :  { %v899_v0 = vadd.f32 %v898_v26, %v896_v62 }
 0x7f2   :  { %v888_v1 = vmul.f32 %v1034_v55, %v887_v63 }
 0x7f3   :  { %901 = vst.msk [vmem:[#allocation8] sm:$0xff] %vm95_vm0, %v899_v0 }
 0x7f4   :  { %v892_v3 = vsel %vm891_vm3, %v1034_v55, %v888_v1 }
 0x7f5   :  { %v894_v4 = vmul.f32 %v892_v3, %v860_v40 }
 0x7f7   :  { %v897_v14 = vmul.f32 %v895_v59, %v894_v4 }
 0x7f9   :  { %v900_v5 = vadd.f32 %v898_v26, %v897_v14 }
 0x7fb   :  { %902 = vst.msk [vmem:[#allocation8 + $0x8] sm:$0xff] %vm95_vm0, %v900_v5 }
 0x7fc   :  { %915 = dma.vmem_to_hbm [thread:$0]  %s908_s7, 256, %s910_s10, [#allocation4], %s1138_s20, %s1138_s20, %s1139_s21  }
 0x7fd   :  { %1135 = dma.done.wait [#allocation4], 256  }
 0x7fe   :  { %1136 = vsyncadd [#allocation4], 4294967040 }
 0x7ff   :  { %920 = vsyncpa [#allocation3], 1 }
 0x800   :  { %921 = vsyncpa [#allocation6], 1 }
 0x801   :  { %922 = vsyncpa [#allocation4], 1 }

</bundles_post_ra>
